<compile_context>
chip_gen: v7x
topology: tpu7x:2x2x1
jax: 0.10.0
libtpu: 0.0.40
codegen_flags: <defaults>
</compile_context>

<pallas_src>
import functools

import jax
import jax.numpy as jnp
from jax.experimental import pallas as pl
from jax.experimental.pallas import tpu as pltpu

LANE = 128  # lane-dense padding multiple for feature dims


# --------------------------------------------------------------------------
# Kernels
# --------------------------------------------------------------------------
def _ffn_kernel_resident(x_ref, w1_ref, b1_ref, w2_ref, b2_ref, o_ref):
    """Weights fully resident in VMEM; one row tile per grid step, no scratch."""
    h = jnp.dot(x_ref[...], w1_ref[...], preferred_element_type=jnp.float32)
    h = jnp.maximum(h + b1_ref[...], 0.0)                    # bias + ReLU in f32
    out = jnp.dot(h.astype(w2_ref.dtype), w2_ref[...],
                  preferred_element_type=jnp.float32)
    o_ref[...] = (out + b2_ref[...]).astype(o_ref.dtype)


def _ffn_kernel_streamed(x_ref, w1_ref, b1_ref, w2_ref, b2_ref, o_ref, acc_ref):
    """Hidden dim streamed in chunks (grid axis 1) with an f32 VMEM accumulator."""
    k = pl.program_id(1)

    @pl.when(k == 0)
    def _init():
        acc_ref[...] = jnp.zeros_like(acc_ref)

    h = jnp.dot(x_ref[...], w1_ref[...], preferred_element_type=jnp.float32)
    h = jnp.maximum(h + b1_ref[...], 0.0)
    acc_ref[...] += jnp.dot(h.astype(w2_ref.dtype), w2_ref[...],
                            preferred_element_type=jnp.float32)

    @pl.when(k == pl.num_programs(1) - 1)
    def _finalize():
        o_ref[...] = (acc_ref[...] + b2_ref[...]).astype(o_ref.dtype)


# --------------------------------------------------------------------------
# Config / sizing helpers
# --------------------------------------------------------------------------
def _ceil_to(x, m):
    return ((x + m - 1) // m) * m


@functools.lru_cache(maxsize=1)
def _select_config():
    """Generation-aware tile sizes and VMEM limit."""
    kind = ""
    try:
        kind = jax.devices()[0].device_kind.lower()
    except Exception:
        pass
    if "v5e" in kind or "v5 lite" in kind or "v5lite" in kind:
        gen, cap, tm, th = "v5e", 128 << 20, 256, 512    # already compute-bound at tm=256
    elif "v6" in kind:
        gen, cap, tm, th = "v6e", 128 << 20, 1024, 1024  # ~650 flop/byte roofline -> big row tile
    elif "v7" in kind:
        gen, cap, tm, th = "v7x", 64 << 20, 512, 512     # 64 MiB VMEM caps the tiles
    else:
        gen, cap, tm, th = "generic", 64 << 20, 256, 512
    try:
        cap = int(pltpu.get_tpu_info().vmem_capacity_bytes)
    except Exception:
        pass
    vmem_limit = max(32 << 20, min(int(0.85 * cap), 104 << 20))
    return {"gen": gen, "vmem_cap": cap, "vmem_limit": vmem_limit, "tm": tm, "th": th}


def _adjust_tm(tm, m):
    """Shrink the row tile for small M; keep >=2 row tiles when it is cheap to."""
    if m <= 256:
        return max(16, _ceil_to(m, 16))
    if m <= 2 * tm:
        # >=2 row tiles so both v7x TensorCores get work on the "parallel" axis.
        return _ceil_to((m + 1) // 2, 16)
    return tm


def _resident_vmem_bytes(tm, d_in_p, d_hid_p, d_out_p, out_itemsize):
    # Constant-index weight blocks are only DMA'd once, but budget for Pallas'
    # default double-buffering (pl.Buffered(1) deliberately not used).
    w = 2 * (d_in_p * d_hid_p + d_hid_p * d_out_p) * 2
    b = 2 * (d_hid_p + d_out_p) * 4
    x = 2 * tm * d_in_p * 2
    o = 2 * tm * d_out_p * out_itemsize
    h = tm * d_hid_p * (4 + 2)        # f32 activation + bf16 re-cast for matmul 2
    return w + b + x + o + h


def _streamed_vmem_bytes(tm, th, d_in_p, d_out_p, out_itemsize):
    x = 2 * tm * d_in_p * 2
    w1 = 2 * d_in_p * th * 2
    b1 = 2 * th * 4
    w2 = 2 * th * d_out_p * 2
    b2 = 2 * d_out_p * 4
    o = 2 * tm * d_out_p * out_itemsize
    acc = tm * d_out_p * 4
    h = tm * th * (4 + 2)
    return x + w1 + b1 + w2 + b2 + o + acc + h


# --------------------------------------------------------------------------
# Parameter preparation (hoisted out of the per-call hot path)
# --------------------------------------------------------------------------
def prepare_ffn_params(w1, b1, w2, b2):
    """Pad to lane-dense sizes and cast weights to bf16 ONCE; reuse per forward.

    Weights are stored (in, out) = torch W.T; biases stay f32.
    """
    d_in, d_hid = w1.shape
    d_hid2, d_out = w2.shape
    assert d_hid == d_hid2 and b1.shape == (d_hid,) and b2.shape == (d_out,)
    d_in_p = _ceil_to(d_in, LANE)
    d_hid_p = _ceil_to(d_hid, LANE)
    d_out_p = _ceil_to(d_out, LANE)
    # Zero padding is exact: padded x cols hit zero W1 rows, padded hidden cols
    # get relu(0 + 0) = 0, and padded W2 rows/cols contribute nothing.
    w1_p = jnp.pad(jnp.asarray(w1),
                   ((0, d_in_p - d_in), (0, d_hid_p - d_hid))).astype(jnp.bfloat16)
    w2_p = jnp.pad(jnp.asarray(w2),
                   ((0, d_hid_p - d_hid), (0, d_out_p - d_out))).astype(jnp.bfloat16)
    b1_p = jnp.pad(jnp.asarray(b1, jnp.float32), (0, d_hid_p - d_hid)).reshape(1, d_hid_p)
    b2_p = jnp.pad(jnp.asarray(b2, jnp.float32), (0, d_out_p - d_out)).reshape(1, d_out_p)
    return {"w1": w1_p, "b1": b1_p, "w2": w2_p, "b2": b2_p,
            "d_in": d_in, "d_hid": d_hid, "d_out": d_out,
            "d_in_p": d_in_p, "d_hid_p": d_hid_p, "d_out_p": d_out_p}


# --------------------------------------------------------------------------
# Forward
# --------------------------------------------------------------------------
def position_wise_ffn_prepared(x, params, *, path="auto"):
    """x: (..., d_in) -> (..., d_out) using pre-padded/cast params."""
    cfg = _select_config()
    d_in, d_out = params["d_in"], params["d_out"]
    d_in_p, d_hid_p, d_out_p = params["d_in_p"], params["d_hid_p"], params["d_out_p"]

    orig_shape = x.shape
    assert orig_shape[-1] == d_in, f"expected last dim {d_in}, got {orig_shape[-1]}"
    x2 = x.reshape(-1, d_in)
    M = x2.shape[0]
    out_dtype = x.dtype
    out_itemsize = jnp.dtype(out_dtype).itemsize

    vmem_limit = cfg["vmem_limit"]
    vmem_budget = vmem_limit - (2 << 20)  # headroom for compiler-internal scratch

    # ---------------- path / tile selection ----------------
    resident_tm = None
    for tm_try in sorted({cfg["tm"], 512, 256, 128}, reverse=True):
        tm_eff = _adjust_tm(tm_try, M)
        if _resident_vmem_bytes(tm_eff, d_in_p, d_hid_p, d_out_p, out_itemsize) <= vmem_budget:
            resident_tm = tm_eff
            break
    use_resident = (path == "resident") or (path == "auto" and resident_tm is not None)

    if use_resident:
        tm = resident_tm if resident_tm is not None else _adjust_tm(cfg["tm"], M)
        m_p = _ceil_to(M, tm)

        if (m_p, d_in_p) != x2.shape:
            x2 = jnp.pad(x2, ((0, m_p - M), (0, d_in_p - d_in)))
        x_p = x2.astype(jnp.bfloat16)

        cost = pl.CostEstimate(
            flops=2 * m_p * (d_in_p * d_hid_p + d_hid_p * d_out_p),
            transcendentals=0,
            bytes_accessed=(x_p.size * 2
                            + params["w1"].size * 2 + params["w2"].size * 2
                            + params["b1"].size * 4 + params["b2"].size * 4
                            + m_p * d_out_p * out_itemsize),
        )

        out = pl.pallas_call(
            _ffn_kernel_resident,
            out_shape=jax.ShapeDtypeStruct((m_p, d_out_p), out_dtype),
            grid_spec=pltpu.PrefetchScalarGridSpec(
                num_scalar_prefetch=0,
                grid=(m_p // tm,),
                in_specs=[
                    pl.BlockSpec((tm, d_in_p), lambda i: (i, 0)),          # X row tile
                    pl.BlockSpec((d_in_p, d_hid_p), lambda i: (0, 0)),     # W1 (resident)
                    pl.BlockSpec((1, d_hid_p), lambda i: (0, 0)),          # b1 (resident)
                    pl.BlockSpec((d_hid_p, d_out_p), lambda i: (0, 0)),    # W2 (resident)
                    pl.BlockSpec((1, d_out_p), lambda i: (0, 0)),          # b2 (resident)
                ],
                out_specs=pl.BlockSpec((tm, d_out_p), lambda i: (i, 0)),
            ),
            compiler_params=pltpu.CompilerParams(
                dimension_semantics=("parallel",),
                vmem_limit_bytes=vmem_limit,
            ),
            cost_estimate=cost,
        )(x_p, params["w1"], params["b1"], params["w2"], params["b2"])

    else:
        # Streamed fallback: hidden dim tiled over an "arbitrary" grid axis with
        # an f32 VMEM accumulator (weights too large to hold resident).
        tm = _adjust_tm(cfg["tm"], M)
        th = min(_ceil_to(cfg["th"], 128), d_hid_p)
        while d_hid_p % th != 0:
            th -= 128
        # Shrink tiles until the estimated footprint fits the VMEM budget.
        while th > 128 and _streamed_vmem_bytes(tm, th, d_in_p, d_out_p, out_itemsize) > vmem_budget:
            th_next = th - 128
            while d_hid_p % th_next != 0:
                th_next -= 128
            th = th_next
        while tm > 128 and _streamed_vmem_bytes(tm, th, d_in_p, d_out_p, out_itemsize) > vmem_budget:
            tm -= 128

        m_p = _ceil_to(M, tm)
        if (m_p, d_in_p) != x2.shape:
            x2 = jnp.pad(x2, ((0, m_p - M), (0, d_in_p - d_in)))
        x_p = x2.astype(jnp.bfloat16)

        n_row_tiles = m_p // tm
        cost = pl.CostEstimate(
            flops=2 * m_p * (d_in_p * d_hid_p + d_hid_p * d_out_p),
            transcendentals=0,
            # Weights are re-streamed once per row tile in this path.
            bytes_accessed=(x_p.size * 2
                            + n_row_tiles * (params["w1"].size * 2 + params["w2"].size * 2
                                             + params["b1"].size * 4 + params["b2"].size * 4)
                            + m_p * d_out_p * out_itemsize),
        )

        out = pl.pallas_call(
            _ffn_kernel_streamed,
            out_shape=jax.ShapeDtypeStruct((m_p, d_out_p), out_dtype),
            grid_spec=pltpu.PrefetchScalarGridSpec(
                num_scalar_prefetch=0,
                grid=(n_row_tiles, d_hid_p // th),
                in_specs=[
                    pl.BlockSpec((tm, d_in_p), lambda i, k: (i, 0)),       # X row tile
                    pl.BlockSpec((d_in_p, th), lambda i, k: (0, k)),       # W1 hidden chunk
                    pl.BlockSpec((1, th), lambda i, k: (0, k)),            # b1 chunk
                    pl.BlockSpec((th, d_out_p), lambda i, k: (k, 0)),      # W2 hidden chunk
                    pl.BlockSpec((1, d_out_p), lambda i, k: (0, 0)),       # b2
                ],
                out_specs=pl.BlockSpec((tm, d_out_p), lambda i, k: (i, 0)),
                scratch_shapes=[pltpu.VMEM((tm, d_out_p), jnp.float32)],
            ),
            compiler_params=pltpu.CompilerParams(
                dimension_semantics=("parallel", "arbitrary"),
                vmem_limit_bytes=vmem_limit,
            ),
            cost_estimate=cost,
        )(x_p, params["w1"], params["b1"], params["w2"], params["b2"])

    return out[:M, :d_out].reshape(*orig_shape[:-1], d_out)


def position_wise_ffn(x, w1, b1, w2, b2, *, path="auto"):
    """Convenience wrapper (pads/casts weights per call; prefer prepare_ffn_params)."""
    return position_wise_ffn_prepared(x, prepare_ffn_params(w1, b1, w2, b2), path=path)


# --------------------------------------------------------------------------
# Init + demo
# --------------------------------------------------------------------------
def init_linear_params(key, fan_in, fan_out, dtype=jnp.float32):
    """Deterministic init mimicking PyTorch nn.Linear defaults.

    Returns W with shape (fan_in, fan_out) (transposed vs torch) and b (fan_out,).
    """
    kw, kb = jax.random.split(key)
    bound = 1.0 / jnp.sqrt(jnp.asarray(fan_in, dtype))
    w = jax.random.uniform(kw, (fan_in, fan_out), dtype, -bound, bound)
    b = jax.random.uniform(kb, (fan_out,), dtype, -bound, bound)
    return w, b


if __name__ == "__main__":
    # Shapes consistent with the module's forward:
    # ffn_num_input=32, ffn_num_hiddens=64, ffn_num_outputs=32
    batch, seq = 2, 8
    d_in, d_hid, d_out = 32, 64, 32

    key = jax.random.PRNGKey(0)
    kx, k1, k2 = jax.random.split(key, 3)

    x = jax.random.normal(kx, (batch, seq, d_in), jnp.float32)
    w1, b1 = init_linear_params(k1, d_in, d_hid)
    w2, b2 = init_linear_params(k2, d_hid, d_out)

    # Pure-JAX f32 reference (kernel uses bf16 MXU inputs -> ~1e-2 tolerance).
    ref = jnp.maximum(x @ w1 + b1, 0.0) @ w2 + b2

    params = prepare_ffn_params(w1, b1, w2, b2)  # hoisted: pad/cast weights once

    # Fast path (weights resident, auto-selected for these shapes).
    out = jax.block_until_ready(position_wise_ffn_prepared(x, params))
    assert out.shape == (batch, seq, d_out)
    assert jnp.allclose(out, ref, atol=3e-2, rtol=3e-2), \
        f"resident path max abs diff {jnp.max(jnp.abs(out - ref))}"

    # Also exercise the streamed fallback path once for coverage.
    out_s = jax.block_until_ready(position_wise_ffn_prepared(x, params, path="streamed"))
    assert jnp.allclose(out_s, ref, atol=3e-2, rtol=3e-2), \
        f"streamed path max abs diff {jnp.max(jnp.abs(out_s - ref))}"

    print("KERNEL_OK")
</pallas_src>

<mosaic_0001>
module attributes {stable_mosaic.version = 11 : i64} {
  func.func @_ffn_kernel_resident(%arg0: i32, %arg1: memref<16x128xbf16, #tpu.memory_space<vmem>>, %arg2: memref<128x128xbf16, #tpu.memory_space<vmem>>, %arg3: memref<1x128xf32, #tpu.memory_space<vmem>>, %arg4: memref<128x128xbf16, #tpu.memory_space<vmem>>, %arg5: memref<1x128xf32, #tpu.memory_space<vmem>>, %arg6: memref<16x128xf32, #tpu.memory_space<vmem>>) attributes {dimension_semantics = [#tpu.dimension_semantics<parallel>], iteration_bounds = array<i64: 1>, scalar_prefetch = 0 : i64, scratch_operands = 0 : i64, tpu.core_type = #tpu.core_type<tc>, window_params = [{transform_indices = @transform_0, window_bounds = array<i64: 16, 128>}, {pipeline_mode = #tpu.pipeline_mode<synchronous>, transform_indices = @transform_1, window_bounds = array<i64: 128, 128>}, {pipeline_mode = #tpu.pipeline_mode<synchronous>, transform_indices = @transform_2, window_bounds = array<i64: 1, 128>}, {pipeline_mode = #tpu.pipeline_mode<synchronous>, transform_indices = @transform_3, window_bounds = array<i64: 128, 128>}, {pipeline_mode = #tpu.pipeline_mode<synchronous>, transform_indices = @transform_4, window_bounds = array<i64: 1, 128>}, {transform_indices = @transform_5, window_bounds = array<i64: 16, 128>}]} {
    %c0 = arith.constant 0 : index
    %c0_0 = arith.constant 0 : index
    %0 = vector.load %arg1[%c0, %c0_0] : memref<16x128xbf16, #tpu.memory_space<vmem>>, vector<16x128xbf16>
    %c0_1 = arith.constant 0 : index
    %c0_2 = arith.constant 0 : index
    %1 = vector.load %arg2[%c0_1, %c0_2] : memref<128x128xbf16, #tpu.memory_space<vmem>>, vector<128x128xbf16>
    %cst = arith.constant dense<0.000000e+00> : vector<16x128xf32>
    %2 = tpu.matmul %0, %1, %cst {dimension_numbers = #tpu.dot_dimension_numbers<[1], [0], [0], [1], [0, 0, 1, 1], [], []>} : vector<16x128xbf16>, vector<128x128xbf16>, vector<16x128xf32> -> vector<16x128xf32>
    %c0_3 = arith.constant 0 : index
    %c0_4 = arith.constant 0 : index
    %3 = vector.load %arg3[%c0_3, %c0_4] : memref<1x128xf32, #tpu.memory_space<vmem>>, vector<1x128xf32>
    %4 = vector.broadcast %3 : vector<1x128xf32> to vector<16x128xf32>
    %5 = arith.addf %2, %4 : vector<16x128xf32>
    %cst_5 = arith.constant 0.000000e+00 : f32
    %6 = vector.broadcast %cst_5 : f32 to vector<16x128xf32>
    %7 = arith.maximumf %5, %6 : vector<16x128xf32>
    %8 = arith.truncf %7 : vector<16x128xf32> to vector<16x128xbf16>
    %c0_6 = arith.constant 0 : index
    %c0_7 = arith.constant 0 : index
    %9 = vector.load %arg4[%c0_6, %c0_7] : memref<128x128xbf16, #tpu.memory_space<vmem>>, vector<128x128xbf16>
    %cst_8 = arith.constant dense<0.000000e+00> : vector<16x128xf32>
    %10 = tpu.matmul %8, %9, %cst_8 {dimension_numbers = #tpu.dot_dimension_numbers<[1], [0], [0], [1], [0, 0, 1, 1], [], []>} : vector<16x128xbf16>, vector<128x128xbf16>, vector<16x128xf32> -> vector<16x128xf32>
    %c0_9 = arith.constant 0 : index
    %c0_10 = arith.constant 0 : index
    %11 = vector.load %arg5[%c0_9, %c0_10] : memref<1x128xf32, #tpu.memory_space<vmem>>, vector<1x128xf32>
    %12 = vector.broadcast %11 : vector<1x128xf32> to vector<16x128xf32>
    %13 = arith.addf %10, %12 : vector<16x128xf32>
    %c0_11 = arith.constant 0 : index
    %c0_12 = arith.constant 0 : index
    %14 = vector.load %arg6[%c0_11, %c0_12] : memref<16x128xf32, #tpu.memory_space<vmem>>, vector<16x128xf32>
    tpu.vector_store %arg6[%c0_11, %c0_12], %13 {strides = array<i32>} : memref<16x128xf32, #tpu.memory_space<vmem>>, vector<16x128xf32>,
    return
  }
  func.func @transform_0(%arg0: i32) -> (i32, i32) {
    %c0_i32 = arith.constant 0 : i32
    %c0_i32_0 = arith.constant 0 : i32
    return %arg0, %c0_i32 : i32, i32
  }
  func.func @transform_1(%arg0: i32) -> (i32, i32) {
    %c0_i32 = arith.constant 0 : i32
    %c0_i32_0 = arith.constant 0 : i32
    %c0_i32_1 = arith.constant 0 : i32
    return %c0_i32, %c0_i32_0 : i32, i32
  }
  func.func @transform_2(%arg0: i32) -> (i32, i32) {
    %c0_i32 = arith.constant 0 : i32
    %c0_i32_0 = arith.constant 0 : i32
    %c0_i32_1 = arith.constant 0 : i32
    return %c0_i32, %c0_i32_0 : i32, i32
  }
  func.func @transform_3(%arg0: i32) -> (i32, i32) {
    %c0_i32 = arith.constant 0 : i32
    %c0_i32_0 = arith.constant 0 : i32
    %c0_i32_1 = arith.constant 0 : i32
    return %c0_i32, %c0_i32_0 : i32, i32
  }
  func.func @transform_4(%arg0: i32) -> (i32, i32) {
    %c0_i32 = arith.constant 0 : i32
    %c0_i32_0 = arith.constant 0 : i32
    %c0_i32_1 = arith.constant 0 : i32
    return %c0_i32, %c0_i32_0 : i32, i32
  }
  func.func @transform_5(%arg0: i32) -> (i32, i32) {
    %c0_i32 = arith.constant 0 : i32
    %c0_i32_0 = arith.constant 0 : i32
    return %arg0, %c0_i32 : i32, i32
  }
}

</mosaic_0001>

<bundles_post_ra>
// kernel: tpu_custom_call.1
= control target key start
LH: loop header
LB: loop body
LE: loop exit
PB: predicated region body
PF: predicated region fallthrough
CT: control target
= control target key end

     0   :  { %10 = vsyncpa [#allocation3], 0  ;;  %s626_s0 = inlined_call_operand.hbm [shape: bf16[16,128], index: 0, kind: input, shape index: {}]   ;;  %s627_s1 = inlined_call_operand.hbm [shape: bf16[128,128], index: 1, kind: input, shape index: {}]   ;;  %s628_s2 = inlined_call_operand.vmem [shape: f32[1,128], index: 2, kind: input, shape index: {}]   ;;  %s629_s3 = inlined_call_operand.hbm [shape: bf16[128,128], index: 3, kind: input, shape index: {}]   ;;  %s630_s4 = inlined_call_operand.vmem [shape: f32[1,128], index: 4, kind: input, shape index: {}]   ;;  %s631_s5 = inlined_call_operand.hbm [shape: f32[16,128], index: 5, kind: output, shape index: {}]  }
   0x1   :  { %11 = vsyncpa [#allocation6], 0 }
   0x2   :  { %12 = vsyncpa [#allocation4], 0  ;;  %s516_s18 = smov [#allocation5]   ;;  %s517_s20 = smov [#allocation2]  }
   0x3   :  { %s30_s19 = sshll.u32 %s516_s18, 4  ;;  %s18_s21 = sshll.u32 %s517_s20, 4  ;;  %s31_s19 = int_to_ptr.vmem [resolvable:$true] %s30_s19  ;;  %s556_s21 = int_to_ptr.vmem [resolvable:$true] %s18_s21 }
   0x4   :  { %s422_s24 = scalar_lea.hbm %s627_s1, 1024 }
   0x5   :  { %p423_p0 = scmp.ne.s32.totalorder %s627_s1, %s422_s24  ;;  %p426_p1 = scmp.lt.u32.totalorder %s422_s24, %s627_s1 }
   0x7   :  { %p428_p2 = pnand %p426_p1, %p423_p0 }
   0x9   :  { %431 = shalt.err (!%p428_p2)
}
   0xa   :  { %s432_s29 = scalar_lea.vmem %s31_s19, 1024  ;;  %p437_p4 = scmp.lt.s32.totalorder %s31_s19, %s31_s19 }
   0xb   :  { %p433_p3 = scmp.ne.s32.totalorder %s31_s19, %s432_s29  ;;  %p438_p5 = scmp.lt.s32.totalorder %s432_s29, %s432_s29 }
   0xd   :  { %p439_p6 = por %p438_p5, %p437_p4 }
   0xf   :  { %p440_p7 = pnand %p439_p6, %p433_p3 }
  0x11   :  { %443 = shalt.err (!%p440_p7)
}
  0x12   :  { %s518_s30 = smov 64   ;;  %s519_s6 = smov 4  }
  0x13   :  { %36 = dma.hbm_to_vmem [thread:$0]  %s627_s1, 1024, %s31_s19, [#allocation6], %s518_s30, %s518_s30, %s519_s6  }
  0x14   :  { %s444_s11 = scalar_lea.hbm %s626_s0, 128 }
  0x15   :  { %p445_p8 = scmp.ne.s32.totalorder %s626_s0, %s444_s11  ;;  %p448_p9 = scmp.lt.u32.totalorder %s444_s11, %s626_s0 }
  0x17   :  { %p450_p10 = pnand %p448_p9, %p445_p8 }
  0x19   :  { %453 = shalt.err (!%p450_p10)
}
  0x1a   :  { %s454_s16 = scalar_lea.vmem %s556_s21, 128  ;;  %p459_p12 = scmp.lt.s32.totalorder %s556_s21, %s556_s21 }
  0x1b   :  { %p455_p11 = scmp.ne.s32.totalorder %s556_s21, %s454_s16  ;;  %p460_p13 = scmp.lt.s32.totalorder %s454_s16, %s454_s16 }
  0x1d   :  { %p461_p0 = por %p460_p13, %p459_p12 }
  0x1f   :  { %p462_p1 = pnand %p461_p0, %p455_p11 }
  0x21   :  { %465 = shalt.err (!%p462_p1)
}
  0x22   :  { %24 = dma.hbm_to_vmem [thread:$0]  %s626_s0, 128, %s556_s21, [#allocation3], %s518_s30, %s518_s30, %s519_s6  }
  0x23   :  { %s520_s18 = smov [#allocation7]   ;;  %s466_s23 = scalar_lea.hbm %s629_s3, 1024 }
  0x24   :  { %s44_s19 = sshll.u32 %s520_s18, 4  ;;  %p467_p2 = scmp.ne.s32.totalorder %s629_s3, %s466_s23  ;;  %s45_s19 = int_to_ptr.vmem [resolvable:$true] %s44_s19 }
  0x25   :  { %p470_p3 = scmp.lt.u32.totalorder %s466_s23, %s629_s3 }
  0x27   :  { %p472_p4 = pnand %p470_p3, %p467_p2 }
  0x29   :  { %475 = shalt.err (!%p472_p4)
}
  0x2a   :  { %s476_s28 = scalar_lea.vmem %s45_s19, 1024  ;;  %p481_p6 = scmp.lt.s32.totalorder %s45_s19, %s45_s19 }
  0x2b   :  { %p477_p5 = scmp.ne.s32.totalorder %s45_s19, %s476_s28  ;;  %p482_p7 = scmp.lt.s32.totalorder %s476_s28, %s476_s28 }
  0x2d   :  { %p483_p8 = por %p482_p7, %p481_p6 }
  0x2f   :  { %p484_p9 = pnand %p483_p8, %p477_p5 }
  0x31   :  { %487 = shalt.err (!%p484_p9)
}
  0x32   :  { %50 = dma.hbm_to_vmem [thread:$0]  %s629_s3, 1024, %s45_s19, [#allocation6], %s518_s30, %s518_s30, %s519_s6  }
  0x33   :  { %510 = dma.done.wait [#allocation3], 128  }
  0x34   :  { %511 = vsyncadd [#allocation3], 4294967168 }
  0x35   :  { %512 = dma.done.wait [#allocation6], 2048  }
  0x36   :  { %513 = vsyncadd [#allocation6], 4294965248  ;;  %v521_v0 = vmov 0.0   ;;  %vm522_vm0 = vmmov 0   ;;  %v405_v1 = vld [vmem:[#allocation5] sm:$0xff]   ;;  %v406_v2 = vld [vmem:[#allocation5 + $0x8] sm:$0xff]  }
  0x37   :  { %355 = vmatprep.subr.bf16.mxu0 %v521_v0  ;;  %371 = vmatprep.mubr.msk.bf16.mxu0 %vm522_vm0, %v521_v0  ;;  %v407_v3 = vld [vmem:[#allocation5 + $0x10] sm:$0xff]   ;;  %v414_v4 = vld [vmem:[#allocation7] sm:$0xff]   ;;  %v408_v5 = vld [vmem:[#allocation5 + $0x18] sm:$0xff]   ;;  %s523_s7 = smov [#allocation8]  }
  0x38   :  { %375 = vmatprep.subr.bf16.mxu1 %v521_v0  ;;  %391 = vmatprep.mubr.msk.bf16.mxu1 %vm522_vm0, %v521_v0  ;;  %v415_v6 = vld [vmem:[#allocation7 + $0x8] sm:$0xff]   ;;  %v409_v7 = vld [vmem:[#allocation5 + $0x20] sm:$0xff]   ;;  %v416_v8 = vld [vmem:[#allocation7 + $0x10] sm:$0xff]   ;;  %s305_s8 = sshll.u32 %s523_s7, 4  ;;  %s306_s8 = int_to_ptr.vmem [resolvable:$true] %s305_s8 }
  0x39   :  { %356 = vmatpush3.bf16.msra.mxu0 %v405_v1  ;;  %376 = vmatpush3.bf16.msra.mxu1 %v414_v4  ;;  %v410_v9 = vld [vmem:[#allocation5 + $0x28] sm:$0xff]   ;;  %v417_v10 = vld [vmem:[#allocation7 + $0x18] sm:$0xff]   ;;  %v411_v11 = vld [vmem:[#allocation5 + $0x30] sm:$0xff]   ;;  %p493_p11 = scmp.lt.s32.totalorder %s306_s8, %s306_s8 }
  0x3a   :  { %357 = vmatprep.subr.bf16.mxu0 %v521_v0  ;;  %377 = vmatprep.subr.bf16.mxu1 %v521_v0  ;;  %v418_v12 = vld [vmem:[#allocation7 + $0x20] sm:$0xff]   ;;  %v412_v13 = vld [vmem:[#allocation5 + $0x38] sm:$0xff]   ;;  %v419_v14 = vld [vmem:[#allocation7 + $0x28] sm:$0xff]  }
  0x3b   :  { %v413_v15 = vld [vmem:[#allocation2] sm:$0xff]   ;;  %v420_v16 = vld [vmem:[#allocation7 + $0x30] sm:$0xff]  }
  0x3c   :  { %v421_v17 = vld [vmem:[#allocation7 + $0x38] sm:$0xff]  }
  0x3d   :  { %358 = vmatpush3.bf16.msra.mxu0 %v406_v2  ;;  %378 = vmatpush3.bf16.msra.mxu1 %v415_v6  ;;  %v318_v18 = vld [vmem:[%s628_s2] ss:$0 sm:$0xff]  ;;  %s488_s2 = scalar_lea.vmem %s306_s8, 256 }
  0x3e   :  { %359 = vmatprep.subr.bf16.mxu0 %v521_v0  ;;  %379 = vmatprep.subr.bf16.mxu1 %v521_v0  ;;  %v328_v28 = vld [vmem:[%s630_s4] ss:$0 sm:$0xff]  ;;  %p489_p10 = scmp.ne.s32.totalorder %s306_s8, %s488_s2  ;;  %p494_p12 = scmp.lt.s32.totalorder %s488_s2, %s488_s2 }
  0x40   :  { %p495_p13 = por %p494_p12, %p493_p11 }
  0x41   :  { %360 = vmatpush3.bf16.msra.mxu0 %v407_v3  ;;  %380 = vmatpush3.bf16.msra.mxu1 %v416_v8 }
  0x42   :  { %361 = vmatprep.subr.bf16.mxu0 %v521_v0  ;;  %381 = vmatprep.subr.bf16.mxu1 %v521_v0  ;;  %p496_p0 = pnand %p495_p13, %p489_p10 }
  0x45   :  { %362 = vmatpush3.bf16.msra.mxu0 %v408_v5  ;;  %382 = vmatpush3.bf16.msra.mxu1 %v417_v10 }
  0x46   :  { %363 = vmatprep.subr.bf16.mxu0 %v521_v0  ;;  %383 = vmatprep.subr.bf16.mxu1 %v521_v0 }
  0x49   :  { %364 = vmatpush3.bf16.msra.mxu0 %v409_v7  ;;  %384 = vmatpush3.bf16.msra.mxu1 %v418_v12 }
  0x4a   :  { %365 = vmatprep.subr.bf16.mxu0 %v521_v0  ;;  %385 = vmatprep.subr.bf16.mxu1 %v521_v0 }
  0x4d   :  { %366 = vmatpush3.bf16.msra.mxu0 %v410_v9  ;;  %386 = vmatpush3.bf16.msra.mxu1 %v419_v14 }
  0x4e   :  { %367 = vmatprep.subr.bf16.mxu0 %v521_v0  ;;  %387 = vmatprep.subr.bf16.mxu1 %v521_v0 }
  0x51   :  { %368 = vmatpush3.bf16.msra.mxu0 %v411_v11  ;;  %388 = vmatpush3.bf16.msra.mxu1 %v420_v16 }
  0x52   :  { %369 = vmatprep.subr.bf16.mxu0 %v521_v0  ;;  %389 = vmatprep.subr.bf16.mxu1 %v521_v0 }
  0x55   :  { %370 = vmatpush3.bf16.msra.mxu0 %v412_v13  ;;  %390 = vmatpush3.bf16.msra.mxu1 %v421_v17 }
  0x58   :  { %372 = vmatmul.mubr.bf16.vlgmr.msra.gmra.mrb[0].mxu0 %v413_v15 }
 0x12b   :  { %v176_v19 = vpop.f32.mrb[0].mxu0 }
 0x12c   :  { %v177_v20 = vadd.f32 %v318_v18, %v176_v19  ;;  %v373_v21 = vpop.f32.mrb[1].mxu0 }
 0x12d   :  { %v179_v22 = vpop.f32.mrb[2].mxu0 }
 0x12e   :  { %v180_v23 = vadd.f32 %v318_v18, %v179_v22  ;;  %v374_v24 = vpop.f32.mrb[3].mxu0  ;;  %v183_v25 = vmax.f32 %v177_v20, 0.0 }
 0x130   :  { %v184_v26 = vmax.f32 %v180_v23, 0.0 }
 0x132   :  { %v185_v27 = vpack.c.bf16 %v184_v26, %v183_v25 }
 0x134   :  { %392 = vmatmul.mubr.bf16.vlgmr.msra.gmra.mrb[0].mxu1 %v185_v27 }
 0x207   :  { %v291_v29 = vpop.f32.mrb[0].mxu1 }
 0x208   :  { %v292_v30 = vadd.f32 %v328_v28, %v291_v29  ;;  %v393_v31 = vpop.f32.mrb[1].mxu1 }
 0x209   :  { %v294_v32 = vpop.f32.mrb[2].mxu1 }
 0x20a   :  { %298 = vst [vmem:[#allocation8] sm:$0xff] %v292_v30  ;;  %v295_v33 = vadd.f32 %v328_v28, %v294_v32  ;;  %v394_v34 = vpop.f32.mrb[3].mxu1 }
 0x20c   :  { %299 = vst [vmem:[#allocation8 + $0x8] sm:$0xff] %v295_v33 }
 0x20d   :  { %499 = shalt.err (!%p496_p0)
}
 0x20e   :  { %s500_s10 = scalar_lea.hbm %s631_s5, 256 }
 0x20f   :  { %p501_p1 = scmp.ne.s32.totalorder %s631_s5, %s500_s10  ;;  %p504_p2 = scmp.lt.u32.totalorder %s500_s10, %s631_s5 }
 0x211   :  { %p506_p3 = pnand %p504_p2, %p501_p1 }
 0x213   :  { %509 = shalt.err (!%p506_p3)
}
 0x214   :  { %s524_s15 = smov 128   ;;  %s525_s16 = smov 8  }
 0x215   :  { %311 = dma.vmem_to_hbm [thread:$0]  %s306_s8, 256, %s631_s5, [#allocation4], %s524_s15, %s524_s15, %s525_s16  }
 0x216   :  { %514 = dma.done.wait [#allocation4], 256  }
 0x217   :  { %515 = vsyncadd [#allocation4], 4294967040 }
 0x218   :  { %315 = vsyncpa [#allocation3], 1 }
 0x219   :  { %316 = vsyncpa [#allocation6], 1 }
 0x21a   :  { %317 = vsyncpa [#allocation4], 1 }

</bundles_post_ra>
